<compile_context>
chip_gen: v6e
topology: v6e:2x2x1
jax: 0.10.0
libtpu: 0.0.40
codegen_flags: <defaults>
</compile_context>

<pallas_src>
import functools

import jax
import jax.numpy as jnp
from jax.experimental import pallas as pl
from jax.experimental.pallas import tpu as pltpu


_MIB = 1024 * 1024
_B_TILE_CANDIDATES = (2048, 1024, 512, 256, 128, 64, 32, 16, 8)


def _round_up(n, m):
    return ((n + m - 1) // m) * m


def _vmem_budget_and_limit():
    """Generation-dependent (tile budget, vmem_limit) in bytes."""
    try:
        physical = int(pltpu.get_tpu_info().vmem_capacity_bytes)
    except Exception:  # unknown chip / interpret mode: be conservative (v7x-like)
        physical = 64 * _MIB
    if physical >= 128 * _MIB:            # v5e / v6e: 128 MiB physical VMEM
        return 96 * _MIB, 100 * _MIB
    return 24 * _MIB, 32 * _MIB           # v7x: 64 MiB physical per TensorCore


def _pick_b_tile_main(B, D, K, K_pad, x_item, ct_item, budget):
    """Largest batch tile (multiple of 8) fitting the VMEM budget.

    Resident BlockSpecs (constant index_map) are still double-buffered by the
    pipeline, so count them twice; streamed x / out tiles likewise.
    """
    resident = 2 * (ct_item * D * K_pad + 4 * K_pad)   # -2*centers^T + ||c||^2
    cap = _round_up(max(B, 1), 8)
    for bt in _B_TILE_CANDIDATES:
        if bt > cap:
            continue
        need = (resident
                + 2 * bt * (x_item * D + 4 * K)        # streamed x tile + out tile
                + 3 * bt * K_pad * 4)                  # f32 intermediates headroom
        if need <= budget:
            return bt
    return 8


def _pick_tiles_k_tiled(B, D, K_pad, x_item, ct_item, budget):
    """(b_tile, k_tile) for the large-K fallback path."""
    cap_b = _round_up(max(B, 1), 8)
    for kt in (2048, 1024, 512, 256, 128):
        if kt > K_pad or K_pad % kt != 0:
            continue
        for bt in _B_TILE_CANDIDATES:
            if bt > cap_b:
                continue
            need = (2 * (ct_item * D * kt + 4 * kt)        # streamed c_t / c_sq tiles
                    + 2 * bt * (x_item * D + 4 * kt + 4)   # x, numerator, denom tiles
                    + 3 * bt * kt * 4)                     # f32 intermediates headroom
            if need <= budget:
                return bt, kt
    return 8, 128


# ----------------------------------------------------------------------------
# Pallas kernels: ClusterAssignment.forward
#   norm_sq[b,k] = ||x[b]||^2 + ||c[k]||^2 - 2 x[b].c[k]
#   q[b,k]       = (1 + norm_sq/alpha)^-((alpha+1)/2)  /  sum_k (...)
# ----------------------------------------------------------------------------
def _cluster_assignment_kernel(x_ref, ct_ref, csq_ref, o_ref, *,
                               num_clusters, alpha):
    x = x_ref[...]            # [b_tile, D]   f32 or bf16 (MXU operand dtype)
    neg2c_t = ct_ref[...]     # [D, K_pad]    (-2 * centers)^T, resident
    c_sq = csq_ref[...]       # [1, K_pad]    ||c||^2 (f32), +inf in padded cols

    # All VPU/EUP math in f32 (v5e has no bf16 VPU/EUP); bf16 only as MXU input.
    x_f32 = x.astype(jnp.float32)
    x_sq = jnp.sum(x_f32 * x_f32, axis=-1, keepdims=True)             # [b_tile, 1]
    cross = jnp.dot(x, neg2c_t, preferred_element_type=jnp.float32)   # -2 x.c
    # Padded cluster columns: c_sq = +inf, cross = 0  ->  norm_sq = +inf
    # -> numerator exactly 0 below, so no per-step mask is needed.
    norm_sq = jnp.maximum(x_sq + c_sq + cross, 0.0)                   # [b_tile, K_pad]

    u = norm_sq if alpha == 1.0 else norm_sq * (1.0 / alpha)
    power = (alpha + 1.0) / 2.0
    if power == 1.0:
        # DEC default (alpha=1): t-kernel collapses to a reciprocal.
        numerator = 1.0 / (1.0 + u)
    else:
        # (1+u)^(-p) = exp(-p*log(1+u)) — EUP ops.  May underflow to 0 for huge
        # distances; the torch reference produces the same degenerate row then.
        numerator = jnp.exp(-power * jnp.log(1.0 + u))

    denom = jnp.sum(numerator, axis=-1, keepdims=True)                # [b_tile, 1]
    inv_denom = pl.reciprocal(denom, approx=False)
    # Narrow store: only the real K columns go back to HBM (masked vst, but
    # K_pad/K fewer writeback bytes — the kernel is memory-bound).
    o_ref[...] = numerator[:, :num_clusters] * inv_denom


def _cluster_assignment_ktiled_kernel(x_ref, ct_ref, csq_ref, num_ref, den_ref,
                                      *, alpha):
    """Large-K fallback: write unnormalized numerator tiles and accumulate the
    per-row denominator across the K grid axis; normalization happens outside."""
    x = x_ref[...]
    x_f32 = x.astype(jnp.float32)
    x_sq = jnp.sum(x_f32 * x_f32, axis=-1, keepdims=True)
    cross = jnp.dot(x, ct_ref[...], preferred_element_type=jnp.float32)
    norm_sq = jnp.maximum(x_sq + csq_ref[...] + cross, 0.0)

    u = norm_sq if alpha == 1.0 else norm_sq * (1.0 / alpha)
    power = (alpha + 1.0) / 2.0
    if power == 1.0:
        numerator = 1.0 / (1.0 + u)
    else:
        numerator = jnp.exp(-power * jnp.log(1.0 + u))

    num_ref[...] = numerator
    partial = jnp.sum(numerator, axis=-1, keepdims=True)

    @pl.when(pl.program_id(1) == 0)
    def _():
        den_ref[...] = partial

    @pl.when(pl.program_id(1) != 0)
    def _():
        den_ref[...] = den_ref[...] + partial


# ----------------------------------------------------------------------------
# Wrappers
# ----------------------------------------------------------------------------
def _cluster_assignment_k_tiled(x_in, neg2c_t, c_sq, num_clusters, alpha,
                                budget, vmem_limit, x_item, ct_item,
                                b_tile=None, k_tile=None):
    B, D = x_in.shape
    K_pad = neg2c_t.shape[1]
    if b_tile is None or k_tile is None:
        bt_auto, kt_auto = _pick_tiles_k_tiled(B, D, K_pad, x_item, ct_item, budget)
        b_tile = b_tile if b_tile is not None else bt_auto
        k_tile = k_tile if k_tile is not None else kt_auto
    B_pad = _round_up(B, b_tile)
    if B_pad != B:
        x_in = jnp.pad(x_in, ((0, B_pad - B), (0, 0)))
    grid = (B_pad // b_tile, K_pad // k_tile)

    cost = pl.CostEstimate(
        flops=2 * B_pad * D * K_pad + 8 * B_pad * K_pad,
        transcendentals=0 if alpha == 1.0 else 2 * B_pad * K_pad,
        bytes_accessed=int(grid[1] * B_pad * D * x_item
                           + grid[0] * (D * K_pad * ct_item + K_pad * 4)
                           + B_pad * K_pad * 4 + B_pad * 4),
    )

    num_out, den_out = pl.pallas_call(
        functools.partial(_cluster_assignment_ktiled_kernel, alpha=alpha),
        out_shape=(jax.ShapeDtypeStruct((B_pad, K_pad), jnp.float32),
                   jax.ShapeDtypeStruct((B_pad, 1), jnp.float32)),
        grid=grid,
        in_specs=[
            pl.BlockSpec((b_tile, D), lambda i, j: (i, 0)),
            pl.BlockSpec((D, k_tile), lambda i, j: (0, j)),
            pl.BlockSpec((1, k_tile), lambda i, j: (0, j)),
        ],
        out_specs=(
            pl.BlockSpec((b_tile, k_tile), lambda i, j: (i, j)),
            pl.BlockSpec((b_tile, 1), lambda i, j: (i, 0)),   # accumulated over j
        ),
        compiler_params=pltpu.CompilerParams(
            dimension_semantics=("parallel", "arbitrary"),
            vmem_limit_bytes=vmem_limit,
        ),
        cost_estimate=cost,
    )(x_in, neg2c_t, c_sq)

    # Normalization outside (cheap relative to the large-K main pass).
    return num_out[:B, :num_clusters] / den_out[:B]


def cluster_assignment(x, cluster_centers, alpha=1.0, *, use_bf16_matmul=False,
                       vmem_budget_bytes=None, _force_k_tiling=False,
                       _b_tile=None, _k_tile=None):
    """x: [B, D], cluster_centers: [K, D] -> soft assignments [B, K] float32.

    use_bf16_matmul: stream x and keep resident centers in bf16 (MXU operands
    only; all VPU/EUP math stays f32).  Recommended on v6e/v7x when the looser
    tolerance of the bf16 cross term is acceptable.
    """
    x = x.astype(jnp.float32)
    c = cluster_centers.astype(jnp.float32)
    B, D = x.shape
    K, _ = c.shape
    alpha = float(alpha)

    budget, vmem_limit = _vmem_budget_and_limit()
    if vmem_budget_bytes is not None:
        budget = int(vmem_budget_bytes)
        vmem_limit = max(vmem_limit, budget)

    # Lane-dense compute: pad K up to a multiple of 128 for the MXU / row sum.
    K_pad = _round_up(K, 128)
    mm_dtype = jnp.bfloat16 if use_bf16_matmul else jnp.float32
    x_item = jnp.dtype(mm_dtype).itemsize
    ct_item = jnp.dtype(mm_dtype).itemsize

    # -2 folded into the resident transposed centers; ||c||^2 precomputed with
    # +inf in the padded columns so they contribute exactly 0 to the t-kernel.
    neg2c_t = jnp.zeros((D, K_pad), mm_dtype).at[:, :K].set(
        (-2.0 * c.T).astype(mm_dtype))                                 # [D, K_pad]
    c_sq = jnp.full((1, K_pad), jnp.inf, jnp.float32).at[:, :K].set(
        jnp.sum(c * c, axis=-1)[None, :])                              # [1, K_pad]
    x_in = x.astype(mm_dtype)

    # Guard: if the resident centers (double-buffered) would blow the budget
    # even at the smallest batch tile, switch to the K-tiled fallback.
    resident = 2 * (ct_item * D * K_pad + 4 * K_pad)
    min_main_need = resident + 2 * 8 * (x_item * D + 4 * K) + 3 * 8 * K_pad * 4
    if _force_k_tiling or min_main_need > budget:
        return _cluster_assignment_k_tiled(
            x_in, neg2c_t, c_sq, K, alpha, budget, vmem_limit,
            x_item, ct_item, b_tile=_b_tile, k_tile=_k_tile)

    b_tile = _b_tile if _b_tile is not None else _pick_b_tile_main(
        B, D, K, K_pad, x_item, ct_item, budget)
    B_pad = _round_up(B, b_tile)
    if B_pad != B:
        x_in = jnp.pad(x_in, ((0, B_pad - B), (0, 0)))

    cost = pl.CostEstimate(
        flops=2 * B_pad * D * K_pad + 8 * B_pad * K_pad,
        transcendentals=0 if alpha == 1.0 else 2 * B_pad * K_pad,
        bytes_accessed=int(B_pad * D * x_item + D * K_pad * ct_item
                           + K_pad * 4 + B_pad * K * 4),
    )

    out = pl.pallas_call(
        functools.partial(_cluster_assignment_kernel,
                          num_clusters=K, alpha=alpha),
        out_shape=jax.ShapeDtypeStruct((B_pad, K), jnp.float32),
        grid=(B_pad // b_tile,),
        in_specs=[
            pl.BlockSpec((b_tile, D), lambda i: (i, 0)),    # x tile, pipelined
            pl.BlockSpec((D, K_pad), lambda i: (0, 0)),     # -2*centers^T, resident
            pl.BlockSpec((1, K_pad), lambda i: (0, 0)),     # ||c||^2, resident
        ],
        # Narrow (b_tile, K) output via the full-array-dim exception: for small
        # K this cuts HBM writeback (the dominant stream) by K_pad/K.
        out_specs=pl.BlockSpec((b_tile, K), lambda i: (i, 0)),
        compiler_params=pltpu.CompilerParams(
            dimension_semantics=("parallel",),
            vmem_limit_bytes=vmem_limit,
        ),
        cost_estimate=cost,
    )(x_in, neg2c_t, c_sq)

    return out[:B, :]


# ----------------------------------------------------------------------------
# Deterministic parameter init + stand-in encoder (plain JAX glue)
# ----------------------------------------------------------------------------
def xavier_uniform(key, shape):
    fan_out, fan_in = shape
    bound = jnp.sqrt(6.0 / (fan_in + fan_out))
    return jax.random.uniform(key, shape, jnp.float32, -bound, bound)


def make_dc_params(key, cluster_number, hidden_dimension, n_features, time_dim):
    k1, k2, k3, k4 = jax.random.split(key, 4)
    return {
        # ClusterAssignment cluster centers: [K, D], Xavier-uniform init
        "cluster_centers": xavier_uniform(k1, (cluster_number, hidden_dimension)),
        # stand-in encoder weights
        "w_enc": xavier_uniform(k2, (hidden_dimension, n_features)).T,   # [F, D]
        "w_hid": xavier_uniform(k3, (hidden_dimension, hidden_dimension)),
        "w_dec": xavier_uniform(k4, (n_features, hidden_dimension)).T,   # [D, F]
    }


def stand_in_encoder(params, time_series, time, demo=None):
    # TODO(synk): the real encoder is an externally injected, pretrained
    # nn.Module (autoencoder); a deterministic linear stand-in is used here.
    encoded = jnp.mean(time_series, axis=1) @ params["w_enc"]          # [B, D]
    encoded_hidden_dim = jnp.tanh(encoded @ params["w_hid"])           # [B, D]
    decoded = encoded @ params["w_dec"]                                # [B, F]
    reconstructed = time_series                                        # [B, L, F]
    reconstructed_time = time                                          # [B, T]
    return reconstructed, reconstructed_time, encoded, encoded_hidden_dim, decoded


def dc_forward(params, time_series, time, demo=None, alpha=1.0):
    (reconstructed, reconstructed_time,
     encoded, encoded_hidden_dim, decoded) = stand_in_encoder(
        params, time_series, time, demo)
    q = cluster_assignment(encoded, params["cluster_centers"], alpha)
    return q, reconstructed, reconstructed_time, encoded, encoded_hidden_dim, decoded


# ----------------------------------------------------------------------------
# Reference (pure JAX) for sanity checks of the Pallas kernels
# ----------------------------------------------------------------------------
def cluster_assignment_ref(x, centers, alpha=1.0):
    norm_sq = jnp.sum((x[:, None, :] - centers[None, :, :]) ** 2, axis=2)
    num = 1.0 / (1.0 + norm_sq / alpha)
    num = num ** ((alpha + 1.0) / 2.0)
    return num / jnp.sum(num, axis=1, keepdims=True)


if __name__ == "__main__":
    # Small shapes consistent with the module's forward signature:
    #   time_series: [batch, length, features], time: [batch, time_dim]
    # B=24 exercises batch tiling + padding (b_tile=16, grid=(2,)).
    B, L, F_FEAT = 24, 16, 4
    HIDDEN = 32        # hidden_dimension (encoder output / embedding dim)
    K = 4              # cluster_number
    T_DIM = 8
    ALPHA = 1.0

    key = jax.random.PRNGKey(0)
    k_params, k_ts, k_time, k_x2, k_c2 = jax.random.split(key, 5)

    params = make_dc_params(k_params, K, HIDDEN, F_FEAT, T_DIM)
    time_series = jax.random.normal(k_ts, (B, L, F_FEAT), jnp.float32)
    time = jax.random.normal(k_time, (B, T_DIM), jnp.float32)

    outs = dc_forward(params, time_series, time, demo=None, alpha=ALPHA)
    q = jax.block_until_ready(outs[0])

    # correctness check against pure-JAX reference (default f32 path)
    encoded = jnp.mean(time_series, axis=1) @ params["w_enc"]
    q_ref = cluster_assignment_ref(encoded, params["cluster_centers"], ALPHA)
    assert q.shape == (B, K)
    assert jnp.allclose(q, q_ref, atol=1e-4, rtol=1e-4), "mismatch vs reference"
    assert jnp.allclose(jnp.sum(q, axis=1), 1.0, atol=1e-5), "rows not normalized"

    # bf16-MXU-operand path (v6e/v7x perf option) — looser tolerance: the
    # ||x||^2+||c||^2-2x.c expansion loses precision with bf16 operands.
    q_bf16 = jax.block_until_ready(
        cluster_assignment(encoded, params["cluster_centers"], ALPHA,
                           use_bf16_matmul=True))
    assert q_bf16.shape == (B, K)
    assert jnp.allclose(q_bf16, q_ref, atol=2e-2, rtol=2e-2), "bf16 path mismatch"

    # K-tiled fallback path (forced small tiles so both the init and the
    # accumulate branches of the denominator output are exercised).
    K2, B2 = 200, 16
    x2 = jax.random.normal(k_x2, (B2, HIDDEN), jnp.float32)
    c2 = xavier_uniform(k_c2, (K2, HIDDEN))
    q2 = jax.block_until_ready(
        cluster_assignment(x2, c2, ALPHA, _force_k_tiling=True,
                           _b_tile=8, _k_tile=128))
    q2_ref = cluster_assignment_ref(x2, c2, ALPHA)
    assert q2.shape == (B2, K2)
    assert jnp.allclose(q2, q2_ref, atol=1e-4, rtol=1e-4), "k-tiled path mismatch"
    assert jnp.allclose(jnp.sum(q2, axis=1), 1.0, atol=1e-5), \
        "k-tiled rows not normalized"

    print("KERNEL_OK")
</pallas_src>

<mosaic_0001>
module attributes {stable_mosaic.version = 11 : i64} {
  func.func @_cluster_assignment_kernel(%arg0: i32, %arg1: memref<16x32xf32, #tpu.memory_space<vmem>>, %arg2: memref<32x128xf32, #tpu.memory_space<vmem>>, %arg3: memref<1x128xf32, #tpu.memory_space<vmem>>, %arg4: memref<16x4xf32, #tpu.memory_space<vmem>>) attributes {dimension_semantics = [#tpu.dimension_semantics<parallel>], iteration_bounds = array<i64: 2>, scalar_prefetch = 0 : i64, scratch_operands = 0 : i64, tpu.core_type = #tpu.core_type<tc>, window_params = [{transform_indices = @transform_0, window_bounds = array<i64: 16, 32>}, {pipeline_mode = #tpu.pipeline_mode<synchronous>, transform_indices = @transform_1, window_bounds = array<i64: 32, 128>}, {pipeline_mode = #tpu.pipeline_mode<synchronous>, transform_indices = @transform_2, window_bounds = array<i64: 1, 128>}, {transform_indices = @transform_3, window_bounds = array<i64: 16, 4>}]} {
    %c0 = arith.constant 0 : index
    %c0_0 = arith.constant 0 : index
    %0 = vector.load %arg1[%c0, %c0_0] : memref<16x32xf32, #tpu.memory_space<vmem>>, vector<16x32xf32>
    %c0_1 = arith.constant 0 : index
    %c0_2 = arith.constant 0 : index
    %1 = vector.load %arg2[%c0_1, %c0_2] : memref<32x128xf32, #tpu.memory_space<vmem>>, vector<32x128xf32>
    %c0_3 = arith.constant 0 : index
    %c0_4 = arith.constant 0 : index
    %2 = vector.load %arg3[%c0_3, %c0_4] : memref<1x128xf32, #tpu.memory_space<vmem>>, vector<1x128xf32>
    %3 = arith.mulf %0, %0 : vector<16x32xf32>
    %cst = arith.constant dense<0.000000e+00> : vector<16xf32>
    %4 = vector.multi_reduction <add>, %3, %cst [1] : vector<16x32xf32> to vector<16xf32>
    %5 = vector.shape_cast %4 : vector<16xf32> to vector<16x1xf32>
    %cst_5 = arith.constant dense<0.000000e+00> : vector<16x128xf32>
    %6 = tpu.matmul %0, %1, %cst_5 {dimension_numbers = #tpu.dot_dimension_numbers<[1], [0], [0], [1], [0, 0, 1, 1], [], []>} : vector<16x32xf32>, vector<32x128xf32>, vector<16x128xf32> -> vector<16x128xf32>
    %7 = vector.broadcast %5 : vector<16x1xf32> to vector<16x128xf32>
    %8 = vector.broadcast %2 : vector<1x128xf32> to vector<16x128xf32>
    %9 = arith.addf %7, %8 : vector<16x128xf32>
    %10 = arith.addf %9, %6 : vector<16x128xf32>
    %cst_6 = arith.constant 0.000000e+00 : f32
    %11 = vector.broadcast %cst_6 : f32 to vector<16x128xf32>
    %12 = arith.maximumf %10, %11 : vector<16x128xf32>
    %cst_7 = arith.constant 1.000000e+00 : f32
    %13 = vector.broadcast %cst_7 : f32 to vector<16x128xf32>
    %14 = arith.addf %13, %12 : vector<16x128xf32>
    %cst_8 = arith.constant 1.000000e+00 : f32
    %15 = vector.broadcast %cst_8 : f32 to vector<16x128xf32>
    %16 = arith.divf %15, %14 : vector<16x128xf32>
    %cst_9 = arith.constant dense<0.000000e+00> : vector<16xf32>
    %17 = vector.multi_reduction <add>, %16, %cst_9 [1] : vector<16x128xf32> to vector<16xf32>
    %18 = vector.shape_cast %17 : vector<16xf32> to vector<16x1xf32>
    %19 = tpu.reciprocal %18 : vector<16x1xf32> -> vector<16x1xf32>
    %20 = vector.extract_strided_slice %16 {offsets = [0, 0], sizes = [16, 4], strides = [1, 1]} : vector<16x128xf32> to vector<16x4xf32>
    %21 = vector.broadcast %19 : vector<16x1xf32> to vector<16x4xf32>
    %22 = arith.mulf %20, %21 : vector<16x4xf32>
    %c0_10 = arith.constant 0 : index
    %c0_11 = arith.constant 0 : index
    %23 = vector.load %arg4[%c0_10, %c0_11] : memref<16x4xf32, #tpu.memory_space<vmem>>, vector<16x4xf32>
    tpu.vector_store %arg4[%c0_10, %c0_11], %22 {strides = array<i32>} : memref<16x4xf32, #tpu.memory_space<vmem>>, vector<16x4xf32>,
    return
  }
  func.func @transform_0(%arg0: i32) -> (i32, i32) {
    %c0_i32 = arith.constant 0 : i32
    %c0_i32_0 = arith.constant 0 : i32
    return %arg0, %c0_i32 : i32, i32
  }
  func.func @transform_1(%arg0: i32) -> (i32, i32) {
    %c0_i32 = arith.constant 0 : i32
    %c0_i32_0 = arith.constant 0 : i32
    %c0_i32_1 = arith.constant 0 : i32
    return %c0_i32, %c0_i32_0 : i32, i32
  }
  func.func @transform_2(%arg0: i32) -> (i32, i32) {
    %c0_i32 = arith.constant 0 : i32
    %c0_i32_0 = arith.constant 0 : i32
    %c0_i32_1 = arith.constant 0 : i32
    return %c0_i32, %c0_i32_0 : i32, i32
  }
  func.func @transform_3(%arg0: i32) -> (i32, i32) {
    %c0_i32 = arith.constant 0 : i32
    %c0_i32_0 = arith.constant 0 : i32
    return %arg0, %c0_i32 : i32, i32
  }
}

</mosaic_0001>

<bundles_post_ra>
// kernel: tpu_custom_call.1
= control target key start
LH: loop header
LB: loop body
LE: loop exit
PB: predicated region body
PF: predicated region fallthrough
CT: control target
= control target key end

     0   :  { %8 = vsyncpa [#allocation3], 0  ;;  %s767_s0 = inlined_call_operand.hbm [shape: f32[32,32], index: 0, kind: input, shape index: {}]   ;;  %s768_s1 = inlined_call_operand.hbm [shape: f32[32,128], index: 1, kind: input, shape index: {}]   ;;  %s769_s2 = inlined_call_operand.vmem [shape: f32[1,128], index: 2, kind: input, shape index: {}]   ;;  %s770_s3 = inlined_call_operand.vmem [shape: f32[32,4], index: 3, kind: output, shape index: {}]  }
   0x1   :  { %10 = vsyncpa [#allocation3 + $0x1], 0 }
   0x2   :  { %11 = vsyncpa [#allocation5], 0  ;;  %s625_s12 = smov 0   ;;  %s627_s13 = smov 0  }
   0x3   :  { %s629_s14 = smov 0   ;;  %s631_s15 = smov 0  }
   0x4 LB: > { %s411_s16 = sadd.s32 4294967295, %s599_s15   ;;  %p37_p0 = scmp.ne.s32.totalorder %s591_s13, %s587_s12  ;;  %s599_s15 = sphi %s631_s15, %s786_s15   ;;  %s595_s14 = sphi %s629_s14, %s785_s14   ;;  %s591_s13 = sphi %s627_s13, %s784_s13   ;;  %s587_s12 = sphi %s625_s12, %s783_s12  }
   0x5   : > { %p647_p1 = scmp.eq.s32.totalorder %s411_s16, 0  ;;  %p413_p2 = scmp.ge.s32.totalorder %s599_s15, 1 }
   0x6   : > { %p116_p3 = scmp.lt.s32.totalorder %s599_s15, 3  ;;  %s601_s20 = smov [#allocation4]  }
   0x7   : > { %s775_s17 = scalar_select %p647_p1, 1, 0 }
   0x8   : > { %p655_p4 = por %p647_p1, %p37_p0  ;;  %p659_p5 = pnand %p413_p2, %p116_p3 }
   0x9   : > { %s128_s21 = sshll.u32 %s601_s20, 4  ;;  %s672_s23 = sadd.s32 1, %s599_s15   ;;  %s129_s21 = int_to_ptr.vmem [resolvable:$true] %s128_s21 }
   0xa   : > { %s776_s18 = scalar_select %p655_p4, 1, 0 }
   0xb   : > { %s777_s19 = scalar_select %p659_p5, 1, 0 }
   0xc   : > { %p453_p6 = pneg %p659_p5  ;;  %s24_s24 = sadd.s32 1, %s595_s14 }
   0xd   : > { %s21_s25 = ssub.s32 %s599_s15, %s672_s23  ;;  %s518_s26 = scalar_lea.vmem %s129_s21, 512 }
   0xe   : > { %p667_p7 = pnand %p453_p6, %p647_p1  ;;  %p519_p9 = scmp.ne.s32.totalorder %s129_s21, %s518_s26 }
   0xf   : > { %p526_p12 = scmp.lt.s32.totalorder %s129_s21, %s129_s21  ;;  %p527_p13 = scmp.lt.s32.totalorder %s518_s26, %s518_s26 }
  0x10   : > { %p509_p8 = pneg %p667_p7 }
  0x11   : > { %p528_p0 = por %p527_p13, %p526_p12 }
  0x12   : > { %p521_p10 = pnand %p519_p9, %p509_p8 }
  0x14   : > { %p522_p11 = pneg %p521_p10 }
  0x16   : > { %p529_p2 = pnand %p528_p0, %p522_p11 }
  0x18   : > { %532 = shalt.err (!%p529_p2)
}
  0x19   : > { %s602_s27 = smov 128   ;;  %s603_s28 = smov 8  }
  0x1a   : > { %456 = dma.hbm_to_vmem [thread:$0]  (!%p667_p7), %s768_s1, 512, %s129_s21, [#allocation5], %s602_s27, %s602_s27, %s603_s28  }
  0x1b   : > { %p22_p3 = scmp.eq.s32.totalorder %s21_s25, 0  ;;  %p31_p6 = scmp.ne.s32.totalorder %s595_s14, %s591_s13 }
  0x1c   : > { %p32_p8 = scmp.eq.s32.totalorder %s599_s15, 0  ;;  %p462_p9 = scmp.lt.s32.totalorder %s599_s15, 2 }
  0x1d   : > { %s692_s4 = scalar_select %p22_p3, %s595_s14, %s24_s24  }
  0x1e   : > { %p33_p10 = por %p32_p8, %p31_p6  ;;  %s145_s5 = sand.u32 1, %s595_s14  }
  0x1f   : > { %s416_s6 = sshll.u32 %s145_s5, 4  ;;  %s429_s7 = sshll.u32 %s599_s15, 8 }
  0x20   : > { %s699_s10 = scalar_lea.hbm %s767_s0, %s429_s7  ;;  %s149_s11 = scalar_lea.vmem [#allocation2], %s416_s6 }
  0x21   : > { %s156_s12 = sshll.u32 %s149_s11, 4  ;;  %p703_p7 = pnand %p462_p9, %p33_p10  ;;  %s701_s12 = int_to_ptr.vmem [resolvable:$true] %s156_s12 }
  0x22   : > { %s707_s21 = scalar_lea.sflag [#allocation3], %s145_s5  ;;  %s533_s22 = scalar_lea.hbm %s699_s10, 256 }
  0x23   : > { %p534_p11 = scmp.ne.s32.totalorder %s699_s10, %s533_s22  ;;  %p535_p12 = pneg %p703_p7 }
  0x24   : > { %s538_s26 = scalar_lea.hbm %s767_s0, 512  ;;  %p539_p2 = scmp.lt.s32.totalorder %s699_s10, %s767_s0 }
  0x25   : > { %p536_p13 = pnand %p535_p12, %p534_p11  ;;  %p540_p3 = scmp.lt.s32.totalorder %s538_s26, %s533_s22 }
  0x27   : > { %p537_p0 = pneg %p536_p13  ;;  %p541_p6 = por %p540_p3, %p539_p2 }
  0x29   : > { %p542_p8 = pnand %p541_p6, %p537_p0 }
  0x2b   : > { %545 = shalt.err (!%p542_p8)
}
  0x2c   : > { %s546_s5 = scalar_lea.vmem %s701_s12, 256  ;;  %s604_s6 = smov [#allocation2]  }
  0x2d   : > { %p547_p9 = scmp.ne.s32.totalorder %s701_s12, %s546_s5  ;;  %s551_s7 = sshll.u32 %s604_s6, 4  ;;  %s552_s7 = int_to_ptr.vmem [resolvable:$false] %s551_s7 }
  0x2e   : > { %s553_s8 = scalar_lea.vmem %s552_s7, 512  ;;  %p554_p13 = scmp.lt.s32.totalorder %s701_s12, %s552_s7 }
  0x2f   : > { %p549_p10 = pnand %p547_p9, %p535_p12  ;;  %p555_p1 = scmp.lt.s32.totalorder %s553_s8, %s546_s5 }
  0x31   : > { %p550_p11 = pneg %p549_p10  ;;  %p556_p4 = por %p555_p1, %p554_p13 }
  0x33   : > { %p557_p5 = pnand %p556_p4, %p550_p11 }
  0x35   : > { %560 = shalt.err (!%p557_p5)
}
  0x36   : > { %460 = dma.hbm_to_vmem [thread:$0]  (!%p703_p7), %s699_s10, 256, %s701_s12, %s707_s21, %s602_s27, %s602_s27, %s603_s28  }
  0x37   : > { %p780_p12 = scmp.ne.s32.totalorder %s777_s19, 0 }
  0x38   : > { %s170_s9 = sand.u32 (!%p780_p12), 1, %s591_s13   ;;  %p781_p1 = scmp.ne.s32.totalorder (!%p780_p12), %s776_s18, 0 }
  0x39   : > { %168 = sbr.rel (%p780_p12) target bundleno = 449 (0x1c1), region = 32  ;;  %s420_s11 = sshll.u32 (!%p780_p12), %s170_s9, 4 }
  0x3a   : > { %s171_s22 = scalar_lea.sflag (!%p780_p12), [#allocation3], %s170_s9  ;;  %s174_s24 = scalar_lea.vmem (!%p780_p12), [#allocation2], %s420_s11 }
  0x3e   : > { %578 = dma.done.wait (%p781_p1), %s171_s22, 256  }
  0x3f   : > { %580 = vsyncadd (%p781_p1), %s171_s22, 4294967040  ;;  %p782_p4 = scmp.ne.s32.totalorder %s775_s17, 0 }
  0x41   : > { %582 = dma.done.wait (%p782_p4), [#allocation5], 512  }
  0x42   : > { %584 = vsyncadd (%p782_p4), [#allocation5], 4294966784  ;;  %vm217_vm0 = vcmask 261120   ;;  %v213_v0 = vld [vmem:[#allocation4 + $0x18] sm:$0xff]  ;;  %v212_v1 = vld [vmem:[#allocation4 + $0x10] sm:$0xff]  ;;  %s422_s19 = sshll.u32 %s411_s16, 1 }
  0x43   : > { %436 = vmatprep.subr.mxu0 %v213_v0  ;;  %v208_v2 = vld [vmem:[%s174_s24] sm:$0xff]  ;;  %v209_v3 = vld [vmem:[%s174_s24 + $0x8] sm:$0xff]  ;;  %p203_p5 = scmp.lt.s32.totalorder %s422_s19, 3  ;;  %vm331_vm1 = vcmask 31744  }
  0x44   : > { %437 = vmatpush3.msra.mxu0 %v213_v0  ;;  %v211_v4 = vld [vmem:[#allocation4 + $0x8] sm:$0xff]  ;;  %v215_v5 = vmul.f32 %v208_v2, %v208_v2  ;;  %444 = vmatprep.mubr.msk.f32.mxu0 %vm217_vm0, %v208_v2  ;;  %v216_v6 = vmul.f32 %v209_v3, %v209_v3  ;;  %v210_v7 = vld [vmem:[#allocation4] sm:$0xff] }
  0x45   : > { %438 = vmatprep.subr.mxu0 %v212_v1  ;;  %v426_v11 = vld [vmem:[%s769_s2] ss:$0 sm:$0xff]  ;;  %s788_s19 = smov (!%p203_p5, %s422_s19), 3 }
  0x46   : > { %439 = vmatpush3.msra.mxu0 %v212_v1  ;;  %v218_v8 = vsel %vm217_vm0, %v215_v5, 0.0  ;;  %v221_v9 = vsel %vm217_vm0, %v216_v6, 0.0  ;;  %s423_s27 = sshll.u32 %s788_s19, 3 }
  0x47   : > { %440 = vmatprep.subr.mxu0 %v211_v4  ;;  %219 = vadd.xlane.f32.xlu0 %v218_v8  ;;  %s206_s12 = scalar_lea.vmem %s770_s3, %s423_s27 }
  0x48   : > { %441 = vmatpush3.msra.mxu0 %v211_v4 }
  0x49   : > { %442 = vmatprep.subr.mxu0 %v210_v7 }
  0x4a   : > { %443 = vmatpush3.msra.mxu0 %v210_v7 }
  0x4b   : > { %445 = vmatmul.mubr.msk.f32.vlgmr.msra.gmra.mxu0 %vm217_vm0, %v209_v3  ;;  %222 = vadd.xlane.f32.xlu0 %v221_v9 }
  0xd0   : > { %v220_v10 = vpop.xlane.xlu0 %219 }
  0xd1   : > { %v311_v14 = vadd.f32 %v426_v11, %v220_v10 }
  0xd4   : > { %v223_v12 = vpop.xlane.xlu0 %222 }
  0xd5   : > { %v312_v13 = vadd.f32 %v426_v11, %v223_v12 }
 0x10b   : > { %v446_v15 = vpop.f32.mrf.mxu0 }
 0x10c   : > { %v314_v16 = vadd.f32 %v446_v15, %v312_v13 }
 0x10d   : > { %v296_v17 = vpop.f32.mrf.mxu0 }
 0x10e   : > { %v313_v18 = vadd.f32 %v311_v14, %v296_v17  ;;  %v316_v19 = vmax.f32 %v314_v16, 0.0 }
 0x110   : > { %v315_v20 = vmax.f32 %v313_v18, 0.0  ;;  %v318_v22 = vadd.f32 1.0, %v316_v19 }
 0x112   : > { %v317_v21 = vadd.f32 1.0, %v315_v20 }
 0x114   : > { %499 = vrcp.f32 %v317_v21 }
 0x115   : > { %501 = vrcp.f32 %v318_v22 }
 0x121   : > { %v500_v23 = vpop.eup %499 }
 0x122   : > { %323 = vadd.xlane.f32.xlu1 %v500_v23  ;;  %v502_v24 = vpop.eup %501 }
 0x126   : > { %325 = vadd.xlane.f32.xlu1 %v502_v24 }
 0x1ab   : > { %v324_v25 = vpop.xlane.xlu1 %323 }
 0x1ac   : > { %503 = vrcp.f32 %v324_v25 }
 0x1af   : > { %v326_v26 = vpop.xlane.xlu1 %325 }
 0x1b0   : > { %505 = vrcp.f32 %v326_v26 }
 0x1b9   : > { %v504_v27 = vpop.eup %503 }
 0x1ba   : > { %v329_v28 = vmul.f32 %v504_v27, %v500_v23 }
 0x1bc   : > { %332 = vst.msk [vmem:[%s206_s12] sm:$0xff] %vm331_vm1, %v329_v28 }
 0x1bd   : > { %v506_v29 = vpop.eup %505 }
 0x1be   : > { %v330_v30 = vmul.f32 %v506_v29, %v502_v24 }
 0x1c0   : > { %333 = vst.msk [vmem:[%s206_s12 + $0x8] sm:$0xff] %vm331_vm1, %v330_v30 }
 0x1c1 PF: > { %p14_p7 = scmp.ge.s32.totalorder %s672_s23, 4   ;;  %s783_s12 = smov %s591_s13 }
 0x1c2   : > { %s784_s13 = smov %s595_s14  ;;  %s785_s14 = smov %s692_s4 }
 0x1c3   : > { %s786_s15 = smov %s672_s23  ;;  %16 = sbr.rel (!%p14_p7) target bundleno = 4 (0x4), region = 76 }
 0x1c8   :  { %356 = vsyncpa [#allocation3], 1 }
 0x1c9   :  { %358 = vsyncpa [#allocation3 + $0x1], 1 }
 0x1ca   :  { %359 = vsyncpa [#allocation5], 1 }

</bundles_post_ra>
